<compile_context>
chip_gen: v5e
topology: v5e:2x2
jax: 0.10.0
libtpu: 0.0.40
codegen_flags: <defaults>
</compile_context>

<pallas_src>
import numpy as np
import jax
import jax.numpy as jnp
from jax import lax
from jax.experimental import pallas as pl
from jax.experimental.pallas import tpu as pltpu


# -----------------------------------------------------------------------------
# Pallas kernel: one batch element per grid step, lane-dense (H, W*C) layout.
# -----------------------------------------------------------------------------
def _dblock_kernel(xp_ref, band1_ref, b3a_ref, band2_ref, ph_ref, pw_ref,
                   phr_ref, rres_ref, bout_ref, o_ref):
    H = 2 * o_ref.shape[0]
    f32 = jnp.float32

    xp = xp_ref[...]                               # (H+2, (W+2)*Cin), zero border
    xr = jnp.maximum(xp, 0.0)                      # first ReLU (border stays zero)

    # ---- first 3x3 conv: 3 banded matmuls (one per kh tap) -------------------
    acc = jnp.dot(xr[0:H, :], band1_ref[0], preferred_element_type=f32)
    acc = acc + jnp.dot(xr[1:H + 1, :], band1_ref[1], preferred_element_type=f32)
    acc = acc + jnp.dot(xr[2:H + 2, :], band1_ref[2], preferred_element_type=f32)
    y = jnp.maximum(acc + b3a_ref[...], 0.0)       # (H, W*Cout) lane-dense

    # ---- second 3x3 conv with row-pool fused into the kh-shift matrices ------
    m = jnp.dot(jnp.dot(ph_ref[0], y, preferred_element_type=f32),
                band2_ref[0], preferred_element_type=f32)
    m = m + jnp.dot(jnp.dot(ph_ref[1], y, preferred_element_type=f32),
                    band2_ref[1], preferred_element_type=f32)
    m = m + jnp.dot(jnp.dot(ph_ref[2], y, preferred_element_type=f32),
                    band2_ref[2], preferred_element_type=f32)

    # ---- column-pool (carries the 0.25 averaging factor) ---------------------
    main = jnp.dot(m, pw_ref[...], preferred_element_type=f32)  # (H/2, (W/2)*Cout)

    # ---- residual: pool first, then 1x1 conv (commutes), fused into 2 dots ---
    res = jnp.dot(jnp.dot(phr_ref[...], xp, preferred_element_type=f32),
                  rres_ref[...], preferred_element_type=f32)

    o_ref[...] = main + res + bout_ref[...]


# -----------------------------------------------------------------------------
# Operand construction (band matrices, fused pooling matrices, tiled biases).
# -----------------------------------------------------------------------------
def _make_operands(w1_oihw, b1, w3a_oihw, b3a, w3b_oihw, b3b, H, W):
    Cout, Cin = w3a_oihw.shape[0], w3a_oihw.shape[1]
    Hp, Wp = H + 2, W + 2

    wa = jnp.transpose(w3a_oihw, (2, 3, 1, 0))        # (3, 3, Cin, Cout)
    wb = jnp.transpose(w3b_oihw, (2, 3, 1, 0))        # (3, 3, Cout, Cout)
    w1 = jnp.transpose(w1_oihw[:, :, 0, 0], (1, 0))   # (Cin, Cout)

    # first 3x3 conv band (input rows are w-padded: Wp*Cin lanes)
    s1 = np.zeros((3, Wp, W), np.float32)
    for kw in range(3):
        for w in range(W):
            s1[kw, w + kw, w] = 1.0
    band1 = jnp.einsum('hkio,kpw->hpiwo', wa, jnp.asarray(s1)
                       ).reshape(3, Wp * Cin, W * Cout)

    # second 3x3 conv band (unpadded rows; w-padding = dropped bands)
    s2 = np.zeros((3, W, W), np.float32)
    for kw in range(3):
        for w in range(W):
            win = w + kw - 1
            if 0 <= win < W:
                s2[kw, win, w] = 1.0
    band2 = jnp.einsum('hkio,kpw->hpiwo', wb, jnp.asarray(s2)
                       ).reshape(3, W * Cout, W * Cout)

    # row-pool fused with the kh shift of the second conv: (3, H/2, H)
    ph = np.zeros((3, H // 2, H), np.float32)
    for kh in range(3):
        for hp in range(H // 2):
            for h in (2 * hp + kh - 1, 2 * hp + kh):
                if 0 <= h < H:
                    ph[kh, hp, h] = 1.0

    # column-pool, carries the 1/4 averaging factor: (W*Cout, (W/2)*Cout)
    pw = np.zeros((W * Cout, (W // 2) * Cout), np.float32)
    for wp_ in range(W // 2):
        for dw in range(2):
            for c in range(Cout):
                pw[(2 * wp_ + dw) * Cout + c, wp_ * Cout + c] = 0.25

    # residual: row-pool straight off the padded input rows
    phr = np.zeros((H // 2, Hp), np.float32)
    for hp in range(H // 2):
        phr[hp, 2 * hp + 1] = 1.0
        phr[hp, 2 * hp + 2] = 1.0
    # residual: column-pool fused with the 1x1 conv weights
    sr = np.zeros((Wp, W // 2), np.float32)
    for wp_ in range(W // 2):
        sr[2 * wp_ + 1, wp_] = 0.25
        sr[2 * wp_ + 2, wp_] = 0.25
    rres = jnp.einsum('pw,io->piwo', jnp.asarray(sr), w1
                      ).reshape(Wp * Cin, (W // 2) * Cout)

    b3a_t = jnp.tile(b3a, (W,)).reshape(1, W * Cout)
    bout = jnp.tile(b1 + b3b, (W // 2,)).reshape(1, (W // 2) * Cout)

    return band1, b3a_t, band2, jnp.asarray(ph), jnp.asarray(pw), \
        jnp.asarray(phr), rres, bout


# -----------------------------------------------------------------------------
# Parameter init (deterministic spectral-norm stand-in), wrapper, reference.
# -----------------------------------------------------------------------------
def _spectral_normalize(w_oihw, n_iter=10):
    O = w_oihw.shape[0]
    wm = w_oihw.reshape(O, -1)
    u = jnp.ones((O,), jnp.float32)
    u = u / jnp.linalg.norm(u)
    v = wm.T @ u
    v = v / (jnp.linalg.norm(v) + 1e-12)
    for _ in range(n_iter):
        v = wm.T @ u
        v = v / (jnp.linalg.norm(v) + 1e-12)
        u = wm @ v
        u = u / (jnp.linalg.norm(u) + 1e-12)
    sigma = u @ (wm @ v)
    return w_oihw / sigma


def init_params(key, Cin, Cout):
    ks = jax.random.split(key, 6)

    def uni(k, shape, fan_in):
        bound = 1.0 / np.sqrt(fan_in)
        return jax.random.uniform(k, shape, jnp.float32, -bound, bound)

    w1 = _spectral_normalize(uni(ks[0], (Cout, Cin, 1, 1), Cin))
    b1 = uni(ks[1], (Cout,), Cin)
    w3a = _spectral_normalize(uni(ks[2], (Cout, Cin, 3, 3), Cin * 9))
    b3a = uni(ks[3], (Cout,), Cin * 9)
    w3b = _spectral_normalize(uni(ks[4], (Cout, Cout, 3, 3), Cout * 9))
    b3b = uni(ks[5], (Cout,), Cout * 9)

    return {"w1_oihw": w1, "b1_v": b1, "w3a_oihw": w3a, "b3a_v": b3a,
            "w3b_oihw": w3b, "b3b_v": b3b}


def dblock_forward(x_nchw, params):
    B, Cin, H, W = x_nchw.shape
    Cout = params["w3a_oihw"].shape[0]
    assert H % 2 == 0 and W % 2 == 0
    Hp, Wp = H + 2, W + 2

    x_nhwc = jnp.transpose(x_nchw, (0, 2, 3, 1)).astype(jnp.float32)
    xp = jnp.pad(x_nhwc, ((0, 0), (1, 1), (1, 1), (0, 0)))
    xp2d = xp.reshape(B, Hp, Wp * Cin)                    # lane-dense input rows

    operands = _make_operands(params["w1_oihw"], params["b1_v"],
                              params["w3a_oihw"], params["b3a_v"],
                              params["w3b_oihw"], params["b3b_v"], H, W)

    def full(shape):
        n = len(shape)
        return pl.BlockSpec(shape, lambda b, _n=n: (0,) * _n)

    grid_spec = pltpu.PrefetchScalarGridSpec(
        num_scalar_prefetch=0,
        grid=(B,),
        in_specs=[pl.BlockSpec((None, Hp, Wp * Cin), lambda b: (b, 0, 0))]
                 + [full(op.shape) for op in operands],
        out_specs=pl.BlockSpec((None, H // 2, (W // 2) * Cout),
                               lambda b: (b, 0, 0)),
    )

    out = pl.pallas_call(
        _dblock_kernel,
        out_shape=jax.ShapeDtypeStruct((B, H // 2, (W // 2) * Cout), jnp.float32),
        grid_spec=grid_spec,
        compiler_params=pltpu.CompilerParams(dimension_semantics=("parallel",)),
    )(xp2d, *operands)

    out = out.reshape(B, H // 2, W // 2, Cout)
    return jnp.transpose(out, (0, 3, 1, 2))               # back to NCHW


def dblock_reference(x_nchw, params):
    """Pure-JAX reference mirroring the PyTorch DBlock.forward semantics."""
    def conv(x, w, b, pad):
        y = lax.conv_general_dilated(
            x, w, (1, 1), [(pad, pad), (pad, pad)],
            dimension_numbers=("NCHW", "OIHW", "NCHW"))
        return y + b.reshape(1, -1, 1, 1)

    def avgpool(x):
        B, C, H, W = x.shape
        return x.reshape(B, C, H // 2, 2, W // 2, 2).mean(axis=(3, 5))

    x1 = avgpool(conv(x_nchw, params["w1_oihw"], params["b1_v"], 0))
    h = jax.nn.relu(x_nchw)
    h = conv(h, params["w3a_oihw"], params["b3a_v"], 1)
    h = jax.nn.relu(h)
    h = conv(h, params["w3b_oihw"], params["b3b_v"], 1)
    h = avgpool(h)
    return x1 + h


if __name__ == "__main__":
    B, Cin, Cout, H, W = 2, 4, 8, 16, 16

    key = jax.random.PRNGKey(0)
    kx, kp = jax.random.split(key)
    x = jax.random.normal(kx, (B, Cin, H, W), jnp.float32)   # NCHW like PyTorch
    params = init_params(kp, Cin, Cout)

    out = dblock_forward(x, params)
    out = jax.block_until_ready(out)

    ref = jax.block_until_ready(dblock_reference(x, params))
    assert out.shape == (B, Cout, H // 2, W // 2), out.shape
    np.testing.assert_allclose(np.asarray(out), np.asarray(ref),
                               rtol=2e-4, atol=2e-4)
    print("KERNEL_OK")
</pallas_src>

<mosaic_0001>
module attributes {stable_mosaic.version = 11 : i64} {
  func.func @_dblock_kernel(%arg0: i32, %arg1: memref<1x18x72xf32, #tpu.memory_space<vmem>>, %arg2: memref<3x72x128xf32, #tpu.memory_space<vmem>>, %arg3: memref<1x128xf32, #tpu.memory_space<vmem>>, %arg4: memref<3x128x128xf32, #tpu.memory_space<vmem>>, %arg5: memref<3x8x16xf32, #tpu.memory_space<vmem>>, %arg6: memref<128x64xf32, #tpu.memory_space<vmem>>, %arg7: memref<8x18xf32, #tpu.memory_space<vmem>>, %arg8: memref<72x64xf32, #tpu.memory_space<vmem>>, %arg9: memref<1x64xf32, #tpu.memory_space<vmem>>, %arg10: memref<1x8x64xf32, #tpu.memory_space<vmem>>) attributes {dimension_semantics = [#tpu.dimension_semantics<parallel>], iteration_bounds = array<i64: 2>, scalar_prefetch = 0 : i64, scratch_operands = 0 : i64, tpu.core_type = #tpu.core_type<tc>, window_params = [{transform_indices = @transform_0, window_bounds = array<i64: 1, 18, 72>}, {pipeline_mode = #tpu.pipeline_mode<synchronous>, transform_indices = @transform_1, window_bounds = array<i64: 3, 72, 128>}, {pipeline_mode = #tpu.pipeline_mode<synchronous>, transform_indices = @transform_2, window_bounds = array<i64: 1, 128>}, {pipeline_mode = #tpu.pipeline_mode<synchronous>, transform_indices = @transform_3, window_bounds = array<i64: 3, 128, 128>}, {pipeline_mode = #tpu.pipeline_mode<synchronous>, transform_indices = @transform_4, window_bounds = array<i64: 3, 8, 16>}, {pipeline_mode = #tpu.pipeline_mode<synchronous>, transform_indices = @transform_5, window_bounds = array<i64: 128, 64>}, {pipeline_mode = #tpu.pipeline_mode<synchronous>, transform_indices = @transform_6, window_bounds = array<i64: 8, 18>}, {pipeline_mode = #tpu.pipeline_mode<synchronous>, transform_indices = @transform_7, window_bounds = array<i64: 72, 64>}, {pipeline_mode = #tpu.pipeline_mode<synchronous>, transform_indices = @transform_8, window_bounds = array<i64: 1, 64>}, {transform_indices = @transform_9, window_bounds = array<i64: 1, 8, 64>}]} {
    %c0 = arith.constant 0 : index
    %c0_0 = arith.constant 0 : index
    %c0_1 = arith.constant 0 : index
    %0 = vector.load %arg1[%c0, %c0_0, %c0_1] : memref<1x18x72xf32, #tpu.memory_space<vmem>>, vector<1x18x72xf32>
    %1 = vector.shape_cast %0 : vector<1x18x72xf32> to vector<18x72xf32>
    %cst = arith.constant 0.000000e+00 : f32
    %2 = vector.broadcast %cst : f32 to vector<18x72xf32>
    %3 = arith.maximumf %1, %2 : vector<18x72xf32>
    %4 = vector.extract_strided_slice %3 {offsets = [0, 0], sizes = [16, 72], strides = [1, 1]} : vector<18x72xf32> to vector<16x72xf32>
    %c0_2 = arith.constant 0 : index
    %c0_3 = arith.constant 0 : index
    %c0_4 = arith.constant 0 : index
    %5 = vector.load %arg2[%c0_2, %c0_3, %c0_4] : memref<3x72x128xf32, #tpu.memory_space<vmem>>, vector<1x72x128xf32>
    %6 = vector.shape_cast %5 : vector<1x72x128xf32> to vector<72x128xf32>
    %cst_5 = arith.constant dense<0.000000e+00> : vector<16x128xf32>
    %7 = tpu.matmul %4, %6, %cst_5 {dimension_numbers = #tpu.dot_dimension_numbers<[1], [0], [0], [1], [0, 0, 1, 1], [], []>} : vector<16x72xf32>, vector<72x128xf32>, vector<16x128xf32> -> vector<16x128xf32>
    %8 = vector.extract_strided_slice %3 {offsets = [1, 0], sizes = [16, 72], strides = [1, 1]} : vector<18x72xf32> to vector<16x72xf32>
    %c1 = arith.constant 1 : index
    %c0_6 = arith.constant 0 : index
    %c0_7 = arith.constant 0 : index
    %9 = vector.load %arg2[%c1, %c0_6, %c0_7] : memref<3x72x128xf32, #tpu.memory_space<vmem>>, vector<1x72x128xf32>
    %10 = vector.shape_cast %9 : vector<1x72x128xf32> to vector<72x128xf32>
    %cst_8 = arith.constant dense<0.000000e+00> : vector<16x128xf32>
    %11 = tpu.matmul %8, %10, %cst_8 {dimension_numbers = #tpu.dot_dimension_numbers<[1], [0], [0], [1], [0, 0, 1, 1], [], []>} : vector<16x72xf32>, vector<72x128xf32>, vector<16x128xf32> -> vector<16x128xf32>
    %12 = arith.addf %7, %11 : vector<16x128xf32>
    %13 = vector.extract_strided_slice %3 {offsets = [2, 0], sizes = [16, 72], strides = [1, 1]} : vector<18x72xf32> to vector<16x72xf32>
    %c2 = arith.constant 2 : index
    %c0_9 = arith.constant 0 : index
    %c0_10 = arith.constant 0 : index
    %14 = vector.load %arg2[%c2, %c0_9, %c0_10] : memref<3x72x128xf32, #tpu.memory_space<vmem>>, vector<1x72x128xf32>
    %15 = vector.shape_cast %14 : vector<1x72x128xf32> to vector<72x128xf32>
    %cst_11 = arith.constant dense<0.000000e+00> : vector<16x128xf32>
    %16 = tpu.matmul %13, %15, %cst_11 {dimension_numbers = #tpu.dot_dimension_numbers<[1], [0], [0], [1], [0, 0, 1, 1], [], []>} : vector<16x72xf32>, vector<72x128xf32>, vector<16x128xf32> -> vector<16x128xf32>
    %17 = arith.addf %12, %16 : vector<16x128xf32>
    %c0_12 = arith.constant 0 : index
    %c0_13 = arith.constant 0 : index
    %18 = vector.load %arg3[%c0_12, %c0_13] : memref<1x128xf32, #tpu.memory_space<vmem>>, vector<1x128xf32>
    %19 = vector.broadcast %18 : vector<1x128xf32> to vector<16x128xf32>
    %20 = arith.addf %17, %19 : vector<16x128xf32>
    %cst_14 = arith.constant 0.000000e+00 : f32
    %21 = vector.broadcast %cst_14 : f32 to vector<16x128xf32>
    %22 = arith.maximumf %20, %21 : vector<16x128xf32>
    %c0_15 = arith.constant 0 : index
    %c0_16 = arith.constant 0 : index
    %c0_17 = arith.constant 0 : index
    %23 = vector.load %arg5[%c0_15, %c0_16, %c0_17] : memref<3x8x16xf32, #tpu.memory_space<vmem>>, vector<1x8x16xf32>
    %24 = vector.shape_cast %23 : vector<1x8x16xf32> to vector<8x16xf32>
    %cst_18 = arith.constant dense<0.000000e+00> : vector<8x128xf32>
    %25 = tpu.matmul %24, %22, %cst_18 {dimension_numbers = #tpu.dot_dimension_numbers<[1], [0], [0], [1], [0, 0, 1, 1], [], []>} : vector<8x16xf32>, vector<16x128xf32>, vector<8x128xf32> -> vector<8x128xf32>
    %c0_19 = arith.constant 0 : index
    %c0_20 = arith.constant 0 : index
    %c0_21 = arith.constant 0 : index
    %26 = vector.load %arg4[%c0_19, %c0_20, %c0_21] : memref<3x128x128xf32, #tpu.memory_space<vmem>>, vector<1x128x128xf32>
    %27 = vector.shape_cast %26 : vector<1x128x128xf32> to vector<128x128xf32>
    %cst_22 = arith.constant dense<0.000000e+00> : vector<8x128xf32>
    %28 = tpu.matmul %25, %27, %cst_22 {dimension_numbers = #tpu.dot_dimension_numbers<[1], [0], [0], [1], [0, 0, 1, 1], [], []>} : vector<8x128xf32>, vector<128x128xf32>, vector<8x128xf32> -> vector<8x128xf32>
    %c1_23 = arith.constant 1 : index
    %c0_24 = arith.constant 0 : index
    %c0_25 = arith.constant 0 : index
    %29 = vector.load %arg5[%c1_23, %c0_24, %c0_25] : memref<3x8x16xf32, #tpu.memory_space<vmem>>, vector<1x8x16xf32>
    %30 = vector.shape_cast %29 : vector<1x8x16xf32> to vector<8x16xf32>
    %cst_26 = arith.constant dense<0.000000e+00> : vector<8x128xf32>
    %31 = tpu.matmul %30, %22, %cst_26 {dimension_numbers = #tpu.dot_dimension_numbers<[1], [0], [0], [1], [0, 0, 1, 1], [], []>} : vector<8x16xf32>, vector<16x128xf32>, vector<8x128xf32> -> vector<8x128xf32>
    %c1_27 = arith.constant 1 : index
    %c0_28 = arith.constant 0 : index
    %c0_29 = arith.constant 0 : index
    %32 = vector.load %arg4[%c1_27, %c0_28, %c0_29] : memref<3x128x128xf32, #tpu.memory_space<vmem>>, vector<1x128x128xf32>
    %33 = vector.shape_cast %32 : vector<1x128x128xf32> to vector<128x128xf32>
    %cst_30 = arith.constant dense<0.000000e+00> : vector<8x128xf32>
    %34 = tpu.matmul %31, %33, %cst_30 {dimension_numbers = #tpu.dot_dimension_numbers<[1], [0], [0], [1], [0, 0, 1, 1], [], []>} : vector<8x128xf32>, vector<128x128xf32>, vector<8x128xf32> -> vector<8x128xf32>
    %35 = arith.addf %28, %34 : vector<8x128xf32>
    %c2_31 = arith.constant 2 : index
    %c0_32 = arith.constant 0 : index
    %c0_33 = arith.constant 0 : index
    %36 = vector.load %arg5[%c2_31, %c0_32, %c0_33] : memref<3x8x16xf32, #tpu.memory_space<vmem>>, vector<1x8x16xf32>
    %37 = vector.shape_cast %36 : vector<1x8x16xf32> to vector<8x16xf32>
    %cst_34 = arith.constant dense<0.000000e+00> : vector<8x128xf32>
    %38 = tpu.matmul %37, %22, %cst_34 {dimension_numbers = #tpu.dot_dimension_numbers<[1], [0], [0], [1], [0, 0, 1, 1], [], []>} : vector<8x16xf32>, vector<16x128xf32>, vector<8x128xf32> -> vector<8x128xf32>
    %c2_35 = arith.constant 2 : index
    %c0_36 = arith.constant 0 : index
    %c0_37 = arith.constant 0 : index
    %39 = vector.load %arg4[%c2_35, %c0_36, %c0_37] : memref<3x128x128xf32, #tpu.memory_space<vmem>>, vector<1x128x128xf32>
    %40 = vector.shape_cast %39 : vector<1x128x128xf32> to vector<128x128xf32>
    %cst_38 = arith.constant dense<0.000000e+00> : vector<8x128xf32>
    %41 = tpu.matmul %38, %40, %cst_38 {dimension_numbers = #tpu.dot_dimension_numbers<[1], [0], [0], [1], [0, 0, 1, 1], [], []>} : vector<8x128xf32>, vector<128x128xf32>, vector<8x128xf32> -> vector<8x128xf32>
    %42 = arith.addf %35, %41 : vector<8x128xf32>
    %c0_39 = arith.constant 0 : index
    %c0_40 = arith.constant 0 : index
    %43 = vector.load %arg6[%c0_39, %c0_40] : memref<128x64xf32, #tpu.memory_space<vmem>>, vector<128x64xf32>
    %cst_41 = arith.constant dense<0.000000e+00> : vector<8x64xf32>
    %44 = tpu.matmul %42, %43, %cst_41 {dimension_numbers = #tpu.dot_dimension_numbers<[1], [0], [0], [1], [0, 0, 1, 1], [], []>} : vector<8x128xf32>, vector<128x64xf32>, vector<8x64xf32> -> vector<8x64xf32>
    %c0_42 = arith.constant 0 : index
    %c0_43 = arith.constant 0 : index
    %45 = vector.load %arg7[%c0_42, %c0_43] : memref<8x18xf32, #tpu.memory_space<vmem>>, vector<8x18xf32>
    %cst_44 = arith.constant dense<0.000000e+00> : vector<8x72xf32>
    %46 = tpu.matmul %45, %1, %cst_44 {dimension_numbers = #tpu.dot_dimension_numbers<[1], [0], [0], [1], [0, 0, 1, 1], [], []>} : vector<8x18xf32>, vector<18x72xf32>, vector<8x72xf32> -> vector<8x72xf32>
    %c0_45 = arith.constant 0 : index
    %c0_46 = arith.constant 0 : index
    %47 = vector.load %arg8[%c0_45, %c0_46] : memref<72x64xf32, #tpu.memory_space<vmem>>, vector<72x64xf32>
    %cst_47 = arith.constant dense<0.000000e+00> : vector<8x64xf32>
    %48 = tpu.matmul %46, %47, %cst_47 {dimension_numbers = #tpu.dot_dimension_numbers<[1], [0], [0], [1], [0, 0, 1, 1], [], []>} : vector<8x72xf32>, vector<72x64xf32>, vector<8x64xf32> -> vector<8x64xf32>
    %49 = arith.addf %44, %48 : vector<8x64xf32>
    %c0_48 = arith.constant 0 : index
    %c0_49 = arith.constant 0 : index
    %50 = vector.load %arg9[%c0_48, %c0_49] : memref<1x64xf32, #tpu.memory_space<vmem>>, vector<1x64xf32>
    %51 = vector.broadcast %50 : vector<1x64xf32> to vector<8x64xf32>
    %52 = arith.addf %49, %51 : vector<8x64xf32>
    %c0_50 = arith.constant 0 : index
    %c0_51 = arith.constant 0 : index
    %c0_52 = arith.constant 0 : index
    %53 = vector.load %arg10[%c0_50, %c0_51, %c0_52] : memref<1x8x64xf32, #tpu.memory_space<vmem>>, vector<1x8x64xf32>
    %54 = vector.shape_cast %53 : vector<1x8x64xf32> to vector<8x64xf32>
    %55 = vector.shape_cast %52 : vector<8x64xf32> to vector<1x8x64xf32>
    tpu.vector_store %arg10[%c0_50, %c0_51, %c0_52], %55 {strides = array<i32>} : memref<1x8x64xf32, #tpu.memory_space<vmem>>, vector<1x8x64xf32>,
    return
  }
  func.func @transform_0(%arg0: i32) -> (i32, i32, i32) {
    %c0_i32 = arith.constant 0 : i32
    %c0_i32_0 = arith.constant 0 : i32
    %c0_i32_1 = arith.constant 0 : i32
    return %arg0, %c0_i32, %c0_i32_0 : i32, i32, i32
  }
  func.func @transform_1(%arg0: i32) -> (i32, i32, i32) {
    %c0_i32 = arith.constant 0 : i32
    %c0_i32_0 = arith.constant 0 : i32
    %c0_i32_1 = arith.constant 0 : i32
    %c0_i32_2 = arith.constant 0 : i32
    return %c0_i32, %c0_i32_0, %c0_i32_1 : i32, i32, i32
  }
  func.func @transform_2(%arg0: i32) -> (i32, i32) {
    %c0_i32 = arith.constant 0 : i32
    %c0_i32_0 = arith.constant 0 : i32
    %c0_i32_1 = arith.constant 0 : i32
    return %c0_i32, %c0_i32_0 : i32, i32
  }
  func.func @transform_3(%arg0: i32) -> (i32, i32, i32) {
    %c0_i32 = arith.constant 0 : i32
    %c0_i32_0 = arith.constant 0 : i32
    %c0_i32_1 = arith.constant 0 : i32
    %c0_i32_2 = arith.constant 0 : i32
    return %c0_i32, %c0_i32_0, %c0_i32_1 : i32, i32, i32
  }
  func.func @transform_4(%arg0: i32) -> (i32, i32, i32) {
    %c0_i32 = arith.constant 0 : i32
    %c0_i32_0 = arith.constant 0 : i32
    %c0_i32_1 = arith.constant 0 : i32
    %c0_i32_2 = arith.constant 0 : i32
    return %c0_i32, %c0_i32_0, %c0_i32_1 : i32, i32, i32
  }
  func.func @transform_5(%arg0: i32) -> (i32, i32) {
    %c0_i32 = arith.constant 0 : i32
    %c0_i32_0 = arith.constant 0 : i32
    %c0_i32_1 = arith.constant 0 : i32
    return %c0_i32, %c0_i32_0 : i32, i32
  }
  func.func @transform_6(%arg0: i32) -> (i32, i32) {
    %c0_i32 = arith.constant 0 : i32
    %c0_i32_0 = arith.constant 0 : i32
    %c0_i32_1 = arith.constant 0 : i32
    return %c0_i32, %c0_i32_0 : i32, i32
  }
  func.func @transform_7(%arg0: i32) -> (i32, i32) {
    %c0_i32 = arith.constant 0 : i32
    %c0_i32_0 = arith.constant 0 : i32
    %c0_i32_1 = arith.constant 0 : i32
    return %c0_i32, %c0_i32_0 : i32, i32
  }
  func.func @transform_8(%arg0: i32) -> (i32, i32) {
    %c0_i32 = arith.constant 0 : i32
    %c0_i32_0 = arith.constant 0 : i32
    %c0_i32_1 = arith.constant 0 : i32
    return %c0_i32, %c0_i32_0 : i32, i32
  }
  func.func @transform_9(%arg0: i32) -> (i32, i32, i32) {
    %c0_i32 = arith.constant 0 : i32
    %c0_i32_0 = arith.constant 0 : i32
    %c0_i32_1 = arith.constant 0 : i32
    return %arg0, %c0_i32, %c0_i32_0 : i32, i32, i32
  }
}

</mosaic_0001>

<bundles_post_ra>
// kernel: tpu_custom_call.1
= control target key start
LH: loop header
LB: loop body
LE: loop exit
PB: predicated region body
PF: predicated region fallthrough
CT: control target
= control target key end

     0   :  { %14 = vsyncpa [#allocation3], 0  ;;  %s1414_s0 = inlined_call_operand.vmem [shape: f32[2,18,72], index: 0, kind: input, shape index: {}]   ;;  %s1415_s1 = inlined_call_operand.vmem [shape: f32[3,72,128], index: 1, kind: input, shape index: {}]   ;;  %s1416_s2 = inlined_call_operand.vmem [shape: f32[1,128], index: 2, kind: input, shape index: {}]   ;;  %s1417_s3 = inlined_call_operand.hbm [shape: f32[3,128,128], index: 3, kind: input, shape index: {}]   ;;  %s1418_s4 = inlined_call_operand.vmem [shape: f32[3,8,16], index: 4, kind: input, shape index: {}]   ;;  %s1419_s5 = inlined_call_operand.vmem [shape: f32[128,64], index: 5, kind: input, shape index: {}]   ;;  %s1420_s6 = inlined_call_operand.vmem [shape: f32[8,18], index: 6, kind: input, shape index: {}]   ;;  %s1421_s7 = inlined_call_operand.vmem [shape: f32[72,64], index: 7, kind: input, shape index: {}]   ;;  %s1422_s8 = inlined_call_operand.vmem [shape: f32[1,64], index: 8, kind: input, shape index: {}]   ;;  %s1423_s9 = inlined_call_operand.hbm [shape: f32[2,8,64], index: 9, kind: output, shape index: {}]  }
   0x1   :  { %15 = vsyncpa [#allocation4], 0 }
   0x2   :  { %17 = vsyncpa [#allocation4 + $0x1], 0  ;;  %s1117_s30 = smov 0   ;;  %s1119_s10 = smov 0  }
   0x3   :  { %s1121_s11 = smov 0   ;;  %s1123_s12 = smov 0  }
   0x4 LB: > { %s1138_s13 = sadd.s32 4294967295, %s1062_s12   ;;  %s867_s14 = sadd.s32 4294967294, %s1062_s12   ;;  %s1062_s12 = sphi %s1123_s12, %s1429_s12   ;;  %s1058_s11 = sphi %s1121_s11, %s1428_s11   ;;  %s1054_s10 = sphi %s1119_s10, %s1427_s10   ;;  %s1050_s30 = sphi %s1117_s30, %s1426_s30  }
   0x5   : > { %s1142_s15 = sadd.s32 1, %s1062_s12   ;;  %s224_s16 = sadd.s32 1, %s1058_s11 }
   0x6   : > { %s221_s17 = ssub.s32 %s1062_s12, %s1142_s15  ;;  %p234_p0 = scmp.ne.s32.totalorder %s1058_s11, %s1054_s10 }
   0x7   : > { %p222_p1 = scmp.eq.s32.totalorder %s221_s17, 0  ;;  %p235_p2 = scmp.eq.s32.totalorder %s1138_s13, 1 }
   0x8   : > { %p240_p3 = scmp.ne.s32.totalorder %s1054_s10, %s1050_s30  ;;  %p241_p4 = scmp.eq.s32.totalorder %s867_s14, 1 }
   0x9   : > { %s1153_s18 = scalar_select %p222_p1, %s1058_s11, %s224_s16  }
   0xa   : > { %p1155_p5 = por %p235_p2, %p234_p0  ;;  %p1159_p6 = por %p241_p4, %p240_p3 }
   0xb   : > { %p868_p7 = scmp.ge.s32.totalorder %s1062_s12, 1  ;;  %p248_p8 = scmp.lt.s32.totalorder %s1062_s12, 3 }
   0xc   : > { %p926_p9 = scmp.eq.s32.totalorder %s1138_s13, 0  ;;  %s265_s23 = sshll.u32 %s1417_s3, 4  ;;  %s266_s23 = int_to_ptr.hbm [resolvable:$true] %s265_s23 }
   0xd   : > { %p249_p10 = pnand %p868_p7, %p248_p8  ;;  %s1064_s24 = smov [#allocation2]  }
   0xe   : > { %s267_s25 = sshll.u32 %s1064_s24, 4  ;;  %s1065_s26 = smov 128   ;;  %s268_s25 = int_to_ptr.vmem [resolvable:$true] %s267_s25 }
   0xf   : > { %p918_p11 = pneg %p249_p10  ;;  %s1066_s27 = smov 8  }
  0x10   : > { %306 = sbr.rel (%p249_p10) target bundleno = 596 (0x254), region = 56 }
  0x11   : > { %p919_p12 = pnand %p926_p9, %p918_p11 }
  0x13   : > { %921 = dma.hbm_to_vmem [thread:$0]  (!%p919_p12), %s266_s23, 6144, %s268_s25, [#allocation3], %s1065_s26, %s1065_s26, %s1066_s27  }
  0x15   : > { %1041 = dma.done.wait (%p926_p9), [#allocation3], 6144  }
  0x16   : > { %1043 = vsyncadd (%p926_p9), [#allocation3], 4294961152  ;;  %p343_p13 = scmp.lt.s32.totalorder %s1138_s13, 1  ;;  %v896_v0 = vld [vmem:[%s1415_s1 + $0xd0] sm:$0xff]  ;;  %v895_v1 = vld [vmem:[%s1415_s1 + $0xc8] sm:$0xff]  ;;  %vm447_vm0 = vcmask 1045504  }
  0x17   : > { %v883_v2 = vld [vmem:[%s1415_s1 + $0x88] sm:$0xff]  ;;  %464 = vmatpush.msra.mxu2 %v896_v0  ;;  %v362_v3 = vld [vmem:[%s1415_s1 + $0x40] sm:$0xff]  ;;  %v361_v6 = vld [vmem:[%s1415_s1 + $0x38] sm:$0xff]  ;;  %vm376_vm1 = vcmask 1046528   ;;  %vm382_vm2 = vcmask 588800   ;;  %vm491_vm3 = vcmask 130048  }
  0x18   : > { %s344_s28 = scalar_select %p343_p13, %s1138_s13, 1  ;;  %394 = vmatpush.msra.mxu0 %v883_v2  ;;  %v882_v4 = vld [vmem:[%s1415_s1 + $0x80] sm:$0xff]  ;;  %421 = vmatpush.msra.mxu1 %v362_v3  ;;  %v881_v7 = vld [vmem:[%s1415_s1 + $0x78] sm:$0xff]  ;;  %v360_v8 = vld [vmem:[%s1415_s1 + $0x30] sm:$0xff]  ;;  %vm697_vm4 = vcmask 1041408   ;;  %vm693_vm5 = vcmask 146432  }
  0x19   : > { %v894_v5 = vld [vmem:[%s1415_s1 + $0xc0] sm:$0xff]  ;;  %465 = vmatpush.msra.mxu2 %v895_v1  ;;  %v893_v9 = vld [vmem:[%s1415_s1 + $0xb8] sm:$0xff]  ;;  %v880_v10 = vld [vmem:[%s1415_s1 + $0x70] sm:$0xff]  ;;  %s340_s14 = sand.u32 1, %s1054_s10   ;;  %vm778_vm6 = vcmask 523264  }
  0x1a   : > { %s911_s23 = smul.u32 24, %s344_s28  ;;  %395 = vmatpush.msra.mxu0 %v882_v4  ;;  %422 = vmatpush.msra.mxu1 %v361_v6  ;;  %v359_v11 = vld [vmem:[%s1415_s1 + $0x28] sm:$0xff]  ;;  %v892_v12 = vld [vmem:[%s1415_s1 + $0xb0] sm:$0xff]  ;;  %v358_v14 = vld [vmem:[%s1415_s1 + $0x20] sm:$0xff]  ;;  %s873_s16 = sshll.u32 %s340_s14, 3 }
  0x1b   : > { %466 = vmatpush.msra.mxu2 %v894_v5  ;;  %v879_v13 = vld [vmem:[%s1415_s1 + $0x68] sm:$0xff]  ;;  %v878_v17 = vld [vmem:[%s1415_s1 + $0x60] sm:$0xff]  ;;  %v357_v20 = vld [vmem:[%s1415_s1 + $0x18] sm:$0xff]  ;;  %s908_s28 = sshll.u32 %s1138_s13, 3  ;;  %s781_s13 = scalar_lea.sflag [#allocation4], %s340_s14 }
  0x1c   : > { %s1213_s17 = scalar_lea.vmem %s1414_s0, %s911_s23  ;;  %396 = vmatpush.msra.mxu0 %v881_v7  ;;  %423 = vmatpush.msra.mxu1 %v360_v8  ;;  %v891_v16 = vld [vmem:[%s1415_s1 + $0xa8] sm:$0xff]  ;;  %v890_v22 = vld [vmem:[%s1415_s1 + $0xa0] sm:$0xff]  ;;  %v877_v23 = vld [vmem:[%s1415_s1 + $0x58] sm:$0xff]  ;;  %s791_s24 = scalar_lea.hbm %s1423_s9, %s908_s28 }
  0x1d   : > { %467 = vmatpush.msra.mxu2 %v893_v9  ;;  %v1228_v15 = vld [vmem:[%s1213_s17] sm:$0xff]  ;;  %v1237_v18 = vld [vmem:[%s1213_s17 + $0x8] sm:$0xff]  ;;  %v356_v24 = vld [vmem:[%s1415_s1 + $0x10] sm:$0xff]  ;;  %s342_s23 = scalar_lea.vmem [#allocation5], %s873_s16  ;;  %s1016_s16 = scalar_lea.hbm %s1423_s9, 16 }
  0x1e   : > { %397 = vmatpush.msra.mxu0 %v880_v10  ;;  %424 = vmatpush.msra.mxu1 %v359_v11  ;;  %v351_v19 = vmax.f32 %v1228_v15, 0.0  ;;  %v352_v21 = vmax.f32 %v1237_v18, 0.0  ;;  %v889_v27 = vld [vmem:[%s1415_s1 + $0x98] sm:$0xff]  ;;  %v876_v28 = vld [vmem:[%s1415_s1 + $0x50] sm:$0xff]  ;;  %v355_v32 = vld [vmem:[%s1415_s1 + $0x8] sm:$0xff]  ;;  %s793_s27 = sshll.u32 %s342_s23, 4  ;;  %s794_s27 = int_to_ptr.vmem [resolvable:$true] %s793_s27 }
  0x1f   : > { %468 = vmatpush.msra.mxu2 %v892_v12  ;;  %v1260_v31 = vld [vmem:[%s1213_s17 + $0x10] sm:$0x3]  ;;  %v875_v34 = vld [vmem:[%s1415_s1 + $0x48] sm:$0xff]  ;;  %v354_v36 = vld [vmem:[%s1415_s1] sm:$0xff]  ;;  %s795_s17 = sshll.u32 %s791_s24, 4  ;;  %s796_s17 = int_to_ptr.hbm [resolvable:$true] %s795_s17 }
  0x20   : > { %398 = vmatpush.msra.mxu0 %v879_v13  ;;  %425 = vmatpush.msra.mxu1 %v358_v14  ;;  %v448_v25 = vrot.slane %v351_v19, 2  ;;  %v449_v26 = vrot.slane %v352_v21, 2  ;;  %v377_v29 = vrot.slane %v351_v19, 1  ;;  %v378_v30 = vrot.slane %v352_v21, 1  ;;  %v888_v33 = vld [vmem:[%s1415_s1 + $0x90] sm:$0xff]  ;;  %v572_v43 = vld [vmem:[#allocation2 + $0xf8] sm:$0xff] }
  0x21   : > { %469 = vmatpush.msra.mxu2 %v891_v16  ;;  %v353_v37 = vmax.f32 %v1260_v31, 0.0  ;;  %v571_v44 = vld [vmem:[#allocation2 + $0xf0] sm:$0xff]  ;;  %573 = vmatpush.msra.mxu3 %v572_v43  ;;  %v570_v45 = vld [vmem:[#allocation2 + $0xe8] sm:$0xff]  ;;  %v569_v46 = vld [vmem:[#allocation2 + $0xe0] sm:$0xff]  ;;  %s1010_s29 = sshra.s32 %s796_s17, 4  ;;  %s1011_s29 = int_to_ptr.hbm [resolvable:$true] %s1010_s29 }
  0x22   : > { %399 = vmatpush.msra.mxu0 %v878_v17  ;;  %426 = vmatpush.msra.mxu1 %v357_v20  ;;  %v450_v35 = vsel %vm447_vm0, %v448_v25, %v449_v26  ;;  %v379_v38 = vsel %vm376_vm1, %v377_v29, %v378_v30  ;;  %v568_v47 = vld [vmem:[#allocation2 + $0xd8] sm:$0xff]  ;;  %v567_v50 = vld [vmem:[#allocation2 + $0xd0] sm:$0xff]  ;;  %v566_v51 = vld [vmem:[#allocation2 + $0xc8] sm:$0xff]  ;;  %s1012_s28 = scalar_lea.hbm %s1011_s29, 8  ;;  %p1017_p3 = scmp.lt.s32.totalorder %s1011_s29, %s1423_s9 }
  0x23   : > { %470 = vmatpush.msra.mxu2 %v890_v22  ;;  %v451_v39 = vrot.slane %v353_v37, 2  ;;  %v380_v40 = vrot.slane %v353_v37, 1  ;;  %574 = vmatpush.msra.mxu3 %v571_v44  ;;  %v565_v52 = vld [vmem:[#allocation2 + $0xc0] sm:$0xff]  ;;  %v564_v54 = vld [vmem:[#allocation2 + $0xb8] sm:$0xff]  ;;  %v563_v58 = vld [vmem:[#allocation2 + $0xb0] sm:$0xff]  ;;  %p1013_p0 = scmp.ne.s32.totalorder %s1011_s29, %s1012_s28  ;;  %p1018_p4 = scmp.lt.s32.totalorder %s1016_s16, %s1012_s28 }
  0x24   : > { %400 = vmatpush.msra.mxu0 %v877_v23  ;;  %427 = vmatpush.msra.mxu1 %v356_v24  ;;  %v562_v60 = vld [vmem:[#allocation2 + $0xa8] sm:$0xff]  ;;  %v964_v62 = vld [vmem:[%s1416_s2] ss:$0 sm:$0xff]  ;;  %v560_v2 = vld [vmem:[#allocation2 + $0x98] sm:$0xff] }
  0x25   : > { %471 = vmatpush.msra.mxu2 %v889_v27  ;;  %v452_v41 = vsel %vm447_vm0, %v449_v26, %v451_v39  ;;  %v381_v42 = vsel %vm376_vm1, %v378_v30, %v380_v40  ;;  %575 = vmatpush.msra.mxu3 %v570_v45  ;;  %v561_v63 = vld [vmem:[#allocation2 + $0xa0] sm:$0xff]  ;;  %v559_v5 = vld [vmem:[#allocation2 + $0x90] sm:$0xff]  ;;  %v558_v7 = vld [vmem:[#allocation2 + $0x88] sm:$0xff]  ;;  %p1014_p1 = pnand %p1013_p0, %p1155_p5  ;;  %p1019_p7 = por %p1018_p4, %p1017_p3 }
  0x26   : > { %401 = vmatpush.msra.mxu0 %v876_v28  ;;  %428 = vmatpush.msra.mxu1 %v355_v32  ;;  %v900_v9 = vld [vmem:[%s1418_s4 + $0x8] sm:$0xff]  ;;  %v902_v10 = vld [vmem:[%s1418_s4 + $0x10] sm:$0xff]  ;;  %v490_v11 = vld [vmem:[%s1418_s4] sm:$0xff] }
  0x27   : > { %472 = vmatpush.msra.mxu2 %v888_v33  ;;  %576 = vmatpush.msra.mxu3 %v569_v46  ;;  %v654_v12 = vld [vmem:[#allocation2 + $0x178] sm:$0xff]  ;;  %v653_v14 = vld [vmem:[#allocation2 + $0x170] sm:$0xff]  ;;  %v652_v17 = vld [vmem:[#allocation2 + $0x168] sm:$0xff]  ;;  %p1015_p2 = pneg %p1014_p1 }
  0x28   : > { %402 = vmatpush.msra.mxu0 %v875_v34  ;;  %897 = vmatmul.msk.f32.vlgmr.msra.gmra.mxu2 %vm382_vm2, %v450_v35  ;;  %v530_v13 = vld [vmem:[#allocation2 + $0x78] sm:$0xff]  ;;  %v529_v16 = vld [vmem:[#allocation2 + $0x70] sm:$0xff]  ;;  %v651_v20 = vld [vmem:[#allocation2 + $0x160] sm:$0xff] }
  0x29   : > { %429 = vmatpush.msra.mxu1 %v354_v36  ;;  %884 = vmatmul.msk.f32.vlgmr.msra.gmra.mxu0 %vm382_vm2, %v379_v38  ;;  %v650_v22 = vld [vmem:[#allocation2 + $0x158] sm:$0xff]  ;;  %v649_v24 = vld [vmem:[#allocation2 + $0x150] sm:$0xff]  ;;  %v648_v26 = vld [vmem:[#allocation2 + $0x148] sm:$0xff]  ;;  %p1020_p8 = pnand %p1019_p7, %p1015_p2 }
  0x2a   : > { %886 = vmatmul.msk.f32.vlgmr.msra.gmra.mxu1 %vm382_vm2, %v351_v19  ;;  %577 = vmatpush.msra.mxu3 %v568_v47  ;;  %v528_v19 = vld [vmem:[#allocation2 + $0x68] sm:$0xff]  ;;  %v526_v23 = vld [vmem:[#allocation2 + $0x58] sm:$0xff]  ;;  %v525_v25 = vld [vmem:[#allocation2 + $0x50] sm:$0xff] }
  0x2b   : > { %v524_v27 = vld [vmem:[#allocation2 + $0x48] sm:$0xff]  ;;  %v647_v28 = vld [vmem:[#allocation2 + $0x140] sm:$0xff]  ;;  %v646_v30 = vld [vmem:[#allocation2 + $0x138] sm:$0xff] }
  0x2c   : > { %578 = vmatpush.msra.mxu3 %v567_v50  ;;  %v523_v29 = vld [vmem:[#allocation2 + $0x40] sm:$0xff]  ;;  %v522_v32 = vld [vmem:[#allocation2 + $0x38] sm:$0xff]  ;;  %v645_v33 = vld [vmem:[#allocation2 + $0x130] sm:$0xff] }
  0x2d   : > { %v521_v34 = vld [vmem:[#allocation2 + $0x30] sm:$0xff]  ;;  %v644_v35 = vld [vmem:[#allocation2 + $0x128] sm:$0xff]  ;;  %v643_v37 = vld [vmem:[#allocation2 + $0x120] sm:$0xff] }
  0x2e   : > { %579 = vmatpush.msra.mxu3 %v566_v51  ;;  %v520_v36 = vld [vmem:[#allocation2 + $0x28] sm:$0xff]  ;;  %v519_v38 = vld [vmem:[#allocation2 + $0x20] sm:$0xff]  ;;  %v642_v39 = vld [vmem:[#allocation2 + $0x118] sm:$0xff] }
  0x2f   : > { %v641_v40 = vld [vmem:[#allocation2 + $0x110] sm:$0xff]  ;;  %v640_v43 = vld [vmem:[#allocation2 + $0x108] sm:$0xff]  ;;  %v639_v45 = vld [vmem:[#allocation2 + $0x100] sm:$0xff] }
  0x30   : > { %898 = vmatmul.msk.f32.gmra.mxu2 %vm382_vm2, %v452_v41  ;;  %580 = vmatpush.msra.mxu3 %v565_v52  ;;  %v557_v41 = vld [vmem:[#allocation2 + $0x80] sm:$0xff]  ;;  %v517_v44 = vld [vmem:[#allocation2 + $0x10] sm:$0xff]  ;;  %v516_v46 = vld [vmem:[#allocation2 + $0x8] sm:$0xff] }
  0x31   : > { %885 = vmatmul.msk.f32.gmra.mxu0 %vm382_vm2, %v381_v42  ;;  %v518_v42 = vld [vmem:[#allocation2 + $0x18] sm:$0xff]  ;;  %v692_v50 = vld [vmem:[%s1420_s6] sm:$0xff] }
  0x32   : > { %887 = vmatmul.msk.f32.gmra.mxu1 %vm382_vm2, %v352_v21  ;;  %581 = vmatpush.msra.mxu3 %v564_v54  ;;  %v527_v21 = vld [vmem:[#allocation2 + $0x60] sm:$0xff]  ;;  %v691_v47 = vld [vmem:[%s1419_s5 + $0x78] sm:$0xff]  ;;  %v686_v54 = vld [vmem:[%s1419_s5 + $0x50] sm:$0xff] }
  0x33   : > { %v729_v51 = vld [vmem:[%s1421_s7 + $0x40] sm:$0xff]  ;;  %v728_v52 = vld [vmem:[%s1421_s7 + $0x38] sm:$0xff] }
  0x34   : > { %582 = vmatpush.msra.mxu3 %v563_v58  ;;  %v682_v58 = vld [vmem:[%s1419_s5 + $0x30] sm:$0xff] }
  0x36   : > { %583 = vmatpush.msra.mxu3 %v562_v60  ;;  %v680_v60 = vld [vmem:[%s1419_s5 + $0x20] sm:$0xff] }
  0x38   : > { %584 = vmatpush.msra.mxu3 %v561_v63 }
  0x3a   : > { %585 = vmatpush.msra.mxu3 %v560_v2  ;;  %v678_v2 = vld [vmem:[%s1419_s5 + $0x10] sm:$0xff] }
  0x3c   : > { %586 = vmatpush.msra.mxu3 %v559_v5  ;;  %v724_v5 = vld [vmem:[%s1421_s7 + $0x18] sm:$0xff] }
  0x3e   : > { %587 = vmatpush.msra.mxu3 %v558_v7  ;;  %v723_v7 = vld [vmem:[%s1421_s7 + $0x10] sm:$0xff] }
  0x40   : > { %588 = vmatpush.msra.mxu3 %v557_v41 }
  0x42   : > { %753 = vmatpush.msrb.mxu3 %v691_v47 }
  0xa6   : > { %v404_v48 = vpop.f32.mrf.mxu0 }
  0xa7   : > { %v431_v49 = vpop.f32.mrf.mxu1 }
  0xa8   : > { %v432_v55 = vadd.f32 %v431_v49, %v404_v48  ;;  %v690_v48 = vld [vmem:[%s1419_s5 + $0x70] sm:$0xff]  ;;  %v515_v49 = vld [vmem:[#allocation2] sm:$0xff] }
  0xa9   : > { %754 = vmatpush.msrb.mxu3 %v690_v48 }
  0xab   : > { %v474_v53 = vpop.f32.mrf.mxu2 }
  0xac   : > { %v480_v61 = vadd.f32 %v474_v53, %v432_v55  ;;  %v727_v53 = vld [vmem:[%s1421_s7 + $0x30] sm:$0xff]  ;;  %v685_v55 = vld [vmem:[%s1419_s5 + $0x48] sm:$0xff] }
  0xae   : > { %v407_v56 = vpop.f32.mrf.mxu0  ;;  %v486_v3 = vadd.f32 %v964_v62, %v480_v61  ;;  %v679_v61 = vld [vmem:[%s1419_s5 + $0x18] sm:$0xff] }
  0xaf   : > { %v434_v57 = vpop.f32.mrf.mxu1 }
  0xb0   : > { %v435_v59 = vadd.f32 %v434_v57, %v407_v56  ;;  %v488_v8 = vmax.f32 %v486_v3, 0.0  ;;  %v684_v56 = vld [vmem:[%s1419_s5 + $0x40] sm:$0xff]  ;;  %v683_v57 = vld [vmem:[%s1419_s5 + $0x38] sm:$0xff] }
  0xb1   : > { %v725_v3 = vld [vmem:[%s1421_s7 + $0x20] sm:$0xff] }
  0xb3   : > { %v477_v0 = vpop.f32.mrf.mxu2 }
  0xb4   : > { %v481_v1 = vadd.f32 %v477_v0, %v435_v59  ;;  %v681_v59 = vld [vmem:[%s1419_s5 + $0x28] sm:$0xff] }
  0xb6   : > { %v487_v4 = vadd.f32 %v964_v62, %v481_v1  ;;  %v726_v1 = vld [vmem:[%s1421_s7 + $0x28] sm:$0xff] }
  0xb8   : > { %v489_v6 = vmax.f32 %v487_v4, 0.0  ;;  %v677_v4 = vld [vmem:[%s1419_s5 + $0x8] sm:$0xff] }
  0xba   : > { %509 = vmatpush.msrb.mxu0 %v489_v6  ;;  %550 = vmatpush.msrb.mxu2 %v489_v6 }
  0xbb   : > { %632 = vmatpush.msrb.mxu1 %v489_v6  ;;  %v676_v6 = vld [vmem:[%s1419_s5] sm:$0xff] }
  0xbc   : > { %510 = vmatpush.msrb.mxu0 %v488_v8  ;;  %551 = vmatpush.msrb.mxu2 %v488_v8 }
  0xbd   : > { %633 = vmatpush.msrb.mxu1 %v488_v8  ;;  %901 = vmatmul.msk.f32.vlgmr.msrb.gmra.mxu2 %vm491_vm3, %v900_v9  ;;  %v722_v8 = vld [vmem:[%s1421_s7 + $0x8] sm:$0xff]  ;;  %v721_v9 = vld [vmem:[%s1421_s7] sm:$0xff] }
  0xbe   : > { %903 = vmatmul.msk.f32.vlgmr.msrb.gmra.mxu1 %vm491_vm3, %v902_v10  ;;  %899 = vmatmul.msk.f32.vlgmr.msrb.gmra.mxu0 %vm491_vm3, %v490_v11 }
  0xbf   : > { %655 = vmatpush.msra.mxu2 %v654_v12  ;;  %593 = vmatpush.msra.mxu0 %v530_v13 }
  0xc0   : > { %904 = vmatpush.msk.msra.mxu1 %vm697_vm4, %v1260_v31  ;;  %v689_v31 = vld [vmem:[%s1419_s5 + $0x68] sm:$0xff] }
  0xc1   : > { %656 = vmatpush.msra.mxu2 %v653_v14  ;;  %594 = vmatpush.msra.mxu0 %v529_v16 }
  0xc2   : > { %715 = vmatpush.msra.mxu1 %v1237_v18  ;;  %v688_v18 = vld [vmem:[%s1419_s5 + $0x60] sm:$0xff]  ;;  %755 = vmatpush.msrb.mxu3 %v689_v31 }
  0xc3   : > { %657 = vmatpush.msra.mxu2 %v652_v17  ;;  %595 = vmatpush.msra.mxu0 %v528_v19  ;;  %v965_v19 = vld [vmem:[%s1422_s8] ss:$0 sm:$0xff] }
  0xc4   : > { %716 = vmatpush.msra.mxu1 %v1228_v15  ;;  %v687_v15 = vld [vmem:[%s1419_s5 + $0x58] sm:$0xff]  ;;  %756 = vmatpush.msrb.mxu3 %v688_v18 }
  0xc5   : > { %658 = vmatpush.msra.mxu2 %v651_v20  ;;  %596 = vmatpush.msra.mxu0 %v527_v21 }
  0xc6   : > { %905 = vmatmul.msk.f32.vlgmr.msra.gmra.mxu1 %vm693_vm5, %v692_v50  ;;  %757 = vmatpush.msrb.mxu3 %v687_v15 }
  0xc7   : > { %659 = vmatpush.msra.mxu2 %v650_v22  ;;  %597 = vmatpush.msra.mxu0 %v526_v23 }
  0xc8   : > { %740 = vmatpush.msrb.mxu1 %v729_v51  ;;  %758 = vmatpush.msrb.mxu3 %v686_v54 }
  0xc9   : > { %660 = vmatpush.msra.mxu2 %v649_v24  ;;  %598 = vmatpush.msra.mxu0 %v525_v25 }
  0xca   : > { %741 = vmatpush.msrb.mxu1 %v728_v52  ;;  %759 = vmatpush.msrb.mxu3 %v685_v55 }
  0xcb   : > { %661 = vmatpush.msra.mxu2 %v648_v26  ;;  %599 = vmatpush.msra.mxu0 %v524_v27 }
  0xcc   : > { %742 = vmatpush.msrb.mxu1 %v727_v53  ;;  %760 = vmatpush.msrb.mxu3 %v684_v56 }
  0xcd   : > { %662 = vmatpush.msra.mxu2 %v647_v28  ;;  %600 = vmatpush.msra.mxu0 %v523_v29 }
  0xce   : > { %761 = vmatpush.msrb.mxu3 %v683_v57  ;;  %743 = vmatpush.msrb.mxu1 %v726_v1 }
  0xcf   : > { %663 = vmatpush.msra.mxu2 %v646_v30  ;;  %601 = vmatpush.msra.mxu0 %v522_v32 }
  0xd0   : > { %762 = vmatpush.msrb.mxu3 %v682_v58  ;;  %744 = vmatpush.msrb.mxu1 %v725_v3 }
  0xd1   : > { %664 = vmatpush.msra.mxu2 %v645_v33  ;;  %602 = vmatpush.msra.mxu0 %v521_v34 }
  0xd2   : > { %763 = vmatpush.msrb.mxu3 %v681_v59  ;;  %745 = vmatpush.msrb.mxu1 %v724_v5 }
  0xd3   : > { %665 = vmatpush.msra.mxu2 %v644_v35  ;;  %603 = vmatpush.msra.mxu0 %v520_v36 }
  0xd4   : > { %764 = vmatpush.msrb.mxu3 %v680_v60  ;;  %746 = vmatpush.msrb.mxu1 %v723_v7 }
  0xd5   : > { %666 = vmatpush.msra.mxu2 %v643_v37  ;;  %604 = vmatpush.msra.mxu0 %v519_v38 }
  0xd6   : > { %765 = vmatpush.msrb.mxu3 %v679_v61  ;;  %747 = vmatpush.msrb.mxu1 %v722_v8 }
  0xd7   : > { %667 = vmatpush.msra.mxu2 %v642_v39  ;;  %605 = vmatpush.msra.mxu0 %v518_v42 }
  0xd8   : > { %766 = vmatpush.msrb.mxu3 %v678_v2  ;;  %748 = vmatpush.msrb.mxu1 %v721_v9 }
  0xd9   : > { %668 = vmatpush.msra.mxu2 %v641_v40  ;;  %606 = vmatpush.msra.mxu0 %v517_v44 }
  0xda   : > { %767 = vmatpush.msrb.mxu3 %v677_v4 }
  0xdb   : > { %669 = vmatpush.msra.mxu2 %v640_v43  ;;  %607 = vmatpush.msra.mxu0 %v516_v46 }
  0xdc   : > { %768 = vmatpush.msrb.mxu3 %v676_v6 }
  0xdd   : > { %670 = vmatpush.msra.mxu2 %v639_v45  ;;  %608 = vmatpush.msra.mxu0 %v515_v49 }
 0x13b   : > { %v635_v62 = vpop.f32.mrf.mxu1  ;;  %v512_v63 = vpop.f32.mrf.mxu0 }
 0x13c   : > { %671 = vmatmul.f32.vlgmr.msra.gmra.mxu2 %v635_v62  ;;  %609 = vmatmul.f32.vlgmr.msra.gmra.mxu0 %v512_v63 }
 0x140   : > { %v553_v0 = vpop.f32.mrf.mxu2 }
 0x141   : > { %589 = vmatmul.f32.vlgmr.msra.gmra.mxu3 %v553_v0 }
 0x143   : > { %v718_v10 = vpop.f32.mrf.mxu1 }
 0x144   : > { %906 = vmatmul.msk.f32.vlgmr.msrb.gmra.mxu1 %vm382_vm2, %v718_v10 }
 0x1b9   : > { %v610_v11 = vpop.f32.mrf.mxu0 }
 0x1bf   : > { %v672_v13 = vpop.f32.mrf.mxu2 }
 0x1c1   : > { %v750_v17 = vpop.f32.mrf.mxu1 }
 0x1c4   : > { %v590_v12 = vpop.f32.mrf.mxu3 }
 0x1c5   : > { %v611_v14 = vadd.f32 %v610_v11, %v590_v12 }
 0x1c7   : > { %v675_v16 = vadd.f32 %v672_v13, %v611_v14 }
 0x1c9   : > { %769 = vmatmul.f32.vlgmr.msrb.gmra.mxu3 %v675_v16 }
 0x24c   : > { %v770_v20 = vpop.f32.mrf.mxu3 }
 0x24d   : > { %v771_v21 = vadd.f32 %v770_v20, %v750_v17 }
 0x24f   : > { %v777_v22 = vadd.f32 %v965_v19, %v771_v21 }
 0x251   : > { %779 = vst.msk [vmem:[%s342_s23] sm:$0xff] %vm778_vm6, %v777_v22 }
 0x252   : > { %1023 = shalt.err (!%p1020_p8)
}
 0x253   : > { %916 = dma.vmem_to_hbm [thread:$0]  (%p1155_p5), %s794_s27, 128, %s796_s17, %s781_s13  }
 0x254 PF: > { %p928_p9 = scmp.ge.s32.totalorder %s1062_s12, 2  ;;  %s807_s14 = sand.u32 1, %s1050_s30  }
 0x255   : > { %s808_s26 = scalar_lea.sflag [#allocation4], %s807_s14 }
 0x256   : > { %p923_p10 = pnand %p928_p9, %p1159_p6 }
 0x258   : > { %p924_p11 = pneg %p923_p10 }
 0x25a   : > { %1045 = dma.done.wait (%p924_p11), %s808_s26, 128  }
 0x25b   : > { %1047 = vsyncadd (%p924_p11), %s808_s26, 4294967168  ;;  %p20_p12 = scmp.ge.s32.totalorder %s1142_s15, 4   ;;  %s1426_s30 = smov %s1054_s10 }
 0x25c   : > { %s1427_s10 = smov %s1058_s11  ;;  %s1428_s11 = smov %s1153_s18 }
 0x25d   : > { %s1429_s12 = smov %s1142_s15  ;;  %22 = sbr.rel (!%p20_p12) target bundleno = 4 (0x4), region = 102 }
 0x262   :  { %814 = vsyncpa [#allocation3], 1 }
 0x263   :  { %816 = vsyncpa [#allocation3 + $0x1], 1 }
 0x264   :  { %817 = vsyncpa [#allocation4], 1 }
 0x265   :  { %819 = vsyncpa [#allocation4 + $0x1], 1 }

</bundles_post_ra>
